<compile_context>
chip_gen: v7x
topology: tpu7x:2x2x1
jax: 0.10.0
libtpu: 0.0.40
codegen_flags: <defaults>
</compile_context>

<pallas_src>
import math

import jax
import jax.numpy as jnp
from jax.experimental import pallas as pl
from jax.experimental.pallas import tpu as pltpu

B = 2          # batch
S = 8          # sequence length
D_MODEL = 32   # d_model
D_INNER = 64   # d_inner (FFN hidden)
N_HEAD = 4     # heads
D_K = 8        # per-head key dim
D_V = 8        # per-head value dim
EPS = 1e-6

N = B * N_HEAD            # merged (batch, head) axis
T = B * S                 # flattened tokens
OUT_LANES = 128           # lane-dense output slab width

# Packed weight-slab row layout (128 lanes wide, f32)
ROW_QKV = 0                              # (N*D_MODEL, 3*D_K)  rows 0:256, lanes 0:24
ROW_WO = ROW_QKV + N * D_MODEL           # (N_HEAD*D_V, D_MODEL) rows 256:288
ROW_W1 = ROW_WO + N_HEAD * D_V           # (D_MODEL, D_INNER)    rows 288:320
ROW_W2 = ROW_W1 + D_MODEL                # (D_INNER, D_MODEL)    rows 320:384
ROW_PARAMS = ROW_W2 + D_INNER            # 8 rows of biases / LN params
SLAB_ROWS = ROW_PARAMS + 8               # 392 (multiple of 8)


def _layernorm(x, gamma, beta):
    mean = jnp.mean(x, axis=-1, keepdims=True)
    var = jnp.mean((x - mean) ** 2, axis=-1, keepdims=True)
    return (x - mean) * jax.lax.rsqrt(var + EPS) * gamma + beta


def encoder_layer_kernel(x_ref, w_ref, out_ref):
    f32 = jnp.float32

    x = x_ref[...].astype(f32)                                   # (T, D) = (16, 32)

    # ---- unpack the single weight slab -------------------------------------
    wqkv = w_ref[ROW_QKV:ROW_QKV + N * D_MODEL, 0:3 * D_K].reshape(N, D_MODEL, 3 * D_K)
    wo = w_ref[ROW_WO:ROW_WO + N_HEAD * D_V, 0:D_MODEL]          # (32, 32)
    w1 = w_ref[ROW_W1:ROW_W1 + D_MODEL, 0:D_INNER]               # (32, 64)
    w2 = w_ref[ROW_W2:ROW_W2 + D_INNER, 0:D_MODEL]               # (64, 32)
    prow = w_ref[ROW_PARAMS:ROW_PARAMS + 8, :]                   # (8, 128)
    bo = prow[0:1, 0:D_MODEL]
    b1 = prow[1:2, 0:D_INNER]
    b2 = prow[2:3, 0:D_MODEL]
    ln1_g = prow[3:4, 0:D_MODEL]
    ln1_b = prow[4:5, 0:D_MODEL]
    ln2_g = prow[5:6, 0:D_MODEL]
    ln2_b = prow[6:7, 0:D_MODEL]

    # ---- Q/K/V projections, heads merged onto the leading batch axis -------
    # n = h*B + b  (the weight slab is replicated across b host-side).
    x3 = x.reshape(B, S, D_MODEL)                                # (2, 8, 32)
    xn = jnp.concatenate([x3] * N_HEAD, axis=0)                  # (8, 8, 32)
    qkv = jnp.einsum("nsc,ncd->nsd", xn, wqkv,
                     preferred_element_type=f32)                 # (8, 8, 24)
    q = qkv[:, :, 0:D_K]                                         # (8, 8, 8)  (pre-scaled)
    k = qkv[:, :, D_K:2 * D_K]
    v = qkv[:, :, 2 * D_K:3 * D_K]

    # ---- scaled dot-product attention, all (b, h) pairs at once ------------
    # TODO(synk): slf_attn_mask (masked_fill with -1e9) not wired in; only the
    #             attn_mask=None path of the reference module is implemented.
    s_ = jnp.einsum("nqd,nkd->nqk", q, k, preferred_element_type=f32)   # (8, 8, 8)
    s_ = s_ - jnp.max(s_, axis=-1, keepdims=True)
    e = jnp.exp(s_)
    attn = e * pl.reciprocal(jnp.sum(e, axis=-1, keepdims=True), approx=True)
    ctx = jnp.einsum("nqk,nkd->nqd", attn, v, preferred_element_type=f32)  # (8, 8, 8)

    # ---- output projection: per-head accumulate (no lane concat) -----------
    ctx4 = ctx.reshape(N_HEAD, B, S, D_V)
    proj = jnp.dot(ctx4[0].reshape(T, D_V), wo[0:D_V, :],
                   preferred_element_type=f32)
    for h in range(1, N_HEAD):
        proj = proj + jnp.dot(ctx4[h].reshape(T, D_V), wo[h * D_V:(h + 1) * D_V, :],
                              preferred_element_type=f32)
    attn_out = _layernorm(proj + bo + x, ln1_g, ln1_b)           # (16, 32)

    # ---- position-wise FFN ---------------------------------------------------
    hdn = jnp.maximum(jnp.dot(attn_out, w1, preferred_element_type=f32) + b1, 0.0)
    ffn = jnp.dot(hdn, w2, preferred_element_type=f32) + b2
    y = _layernorm(ffn + attn_out, ln2_g, ln2_b)                 # (16, 32)

    # ---- single lane-dense output slab: [ y | attn(h=0..3) | zero pad ] -----
    attn4 = attn.reshape(N_HEAD, B, S, S)
    pieces = [attn4[h].reshape(T, S) for h in range(N_HEAD)]     # each (16, 8)
    pad = jnp.zeros((T, OUT_LANES - D_MODEL - N_HEAD * S), f32)  # (16, 64)
    out_ref[...] = jnp.concatenate([y] + pieces + [pad], axis=-1).astype(out_ref.dtype)


def prepare_params(params):
    """One-time parameter packing (hoisted out of the per-call path).

    Folds 1/sqrt(d_k) into the Wq columns and lays every weight/bias/LN vector
    into a single (SLAB_ROWS, 128) f32 slab.
    """
    scale = 1.0 / math.sqrt(D_K)
    blocks = []
    for n in range(N):                      # n = h*B + b (weights replicated over b)
        h = n // B
        blocks.append(jnp.concatenate(
            [params["wq"][:, h * D_K:(h + 1) * D_K] * scale,
             params["wk"][:, h * D_K:(h + 1) * D_K],
             params["wv"][:, h * D_V:(h + 1) * D_V]], axis=1))   # (32, 24)
    wqkv_n = jnp.concatenate(blocks, axis=0)                     # (256, 24)

    slab = jnp.zeros((SLAB_ROWS, 128), jnp.float32)
    slab = slab.at[ROW_QKV:ROW_QKV + N * D_MODEL, 0:3 * D_K].set(wqkv_n)
    slab = slab.at[ROW_WO:ROW_WO + N_HEAD * D_V, 0:D_MODEL].set(params["wo"])
    slab = slab.at[ROW_W1:ROW_W1 + D_MODEL, 0:D_INNER].set(params["w1"])
    slab = slab.at[ROW_W2:ROW_W2 + D_INNER, 0:D_MODEL].set(params["w2"])
    slab = slab.at[ROW_PARAMS + 0, 0:D_MODEL].set(params["bo"][0])
    slab = slab.at[ROW_PARAMS + 1, 0:D_INNER].set(params["b1"][0])
    slab = slab.at[ROW_PARAMS + 2, 0:D_MODEL].set(params["b2"][0])
    slab = slab.at[ROW_PARAMS + 3, 0:D_MODEL].set(params["ln1_g"][0])
    slab = slab.at[ROW_PARAMS + 4, 0:D_MODEL].set(params["ln1_b"][0])
    slab = slab.at[ROW_PARAMS + 5, 0:D_MODEL].set(params["ln2_g"][0])
    slab = slab.at[ROW_PARAMS + 6, 0:D_MODEL].set(params["ln2_b"][0])
    return slab


def encoder_layer(x, weight_slab):
    """x: (B, S, D_MODEL) f32; weight_slab from prepare_params().
    Returns (enc_output (B,S,D), enc_slf_attn (B,H,S,S))."""
    Bsz, Seq, Dm = x.shape
    Tn = Bsz * Seq

    flops = (2 * N * S * D_MODEL * 3 * D_K          # qkv projection
             + 2 * N * S * S * D_K                  # scores
             + 2 * N * S * S * D_V                  # context
             + 2 * Tn * N_HEAD * D_V * Dm           # output projection
             + 2 * Tn * Dm * D_INNER * 2)           # FFN
    bytes_accessed = 4 * (Tn * Dm + SLAB_ROWS * 128 + Tn * OUT_LANES)
    cost = pl.CostEstimate(flops=flops, transcendentals=N * S * S + N * S + 2 * Tn,
                           bytes_accessed=bytes_accessed)

    out_slab = pl.pallas_call(
        encoder_layer_kernel,
        out_shape=jax.ShapeDtypeStruct((Tn, OUT_LANES), jnp.float32),
        in_specs=[pl.BlockSpec(memory_space=pltpu.MemorySpace.VMEM),
                  pl.BlockSpec(memory_space=pltpu.MemorySpace.VMEM)],
        out_specs=pl.BlockSpec(memory_space=pltpu.MemorySpace.VMEM),
        cost_estimate=cost,
    )(x.reshape(Tn, Dm), weight_slab)

    enc_output = out_slab[:, 0:Dm].reshape(Bsz, Seq, Dm)
    # out_slab[b*S+q, Dm + h*S + k] = attn[b, h, q, k]
    enc_slf_attn = (out_slab[:, Dm:Dm + N_HEAD * Seq]
                    .reshape(Bsz, Seq, N_HEAD, Seq)
                    .transpose(0, 2, 1, 3))
    return enc_output, enc_slf_attn


# ---------------------------------------------------------------------------
# Pure-JAX reference
# ---------------------------------------------------------------------------
def encoder_layer_ref(x, p):
    def ln(v, g, b):
        m = jnp.mean(v, axis=-1, keepdims=True)
        var = jnp.mean((v - m) ** 2, axis=-1, keepdims=True)
        return (v - m) / jnp.sqrt(var + EPS) * g + b

    q = (x @ p["wq"]).reshape(B, S, N_HEAD, D_K).transpose(0, 2, 1, 3)
    k = (x @ p["wk"]).reshape(B, S, N_HEAD, D_K).transpose(0, 2, 1, 3)
    v = (x @ p["wv"]).reshape(B, S, N_HEAD, D_V).transpose(0, 2, 1, 3)
    scores = jnp.einsum("bhqd,bhkd->bhqk", q, k) / math.sqrt(D_K)
    attn = jax.nn.softmax(scores, axis=-1)
    o = jnp.einsum("bhqk,bhkd->bhqd", attn, v).transpose(0, 2, 1, 3).reshape(B, S, N_HEAD * D_V)
    o = o @ p["wo"] + p["bo"][0]
    o = ln(o + x, p["ln1_g"][0], p["ln1_b"][0])
    h = jnp.maximum(o @ p["w1"] + p["b1"][0], 0.0)
    f = h @ p["w2"] + p["b2"][0]
    y = ln(f + o, p["ln2_g"][0], p["ln2_b"][0])
    return y, attn


if __name__ == "__main__":
    key = jax.random.PRNGKey(0)
    keys = jax.random.split(key, 10)

    def init(k, shape, scale=0.1):
        return scale * jax.random.normal(k, shape, dtype=jnp.float32)

    params = {
        # weights stored (in, out) == PyTorch weight.T
        "wq": init(keys[0], (D_MODEL, N_HEAD * D_K)),
        "wk": init(keys[1], (D_MODEL, N_HEAD * D_K)),
        "wv": init(keys[2], (D_MODEL, N_HEAD * D_V)),
        "wo": init(keys[3], (N_HEAD * D_V, D_MODEL)),
        "bo": init(keys[4], (1, D_MODEL)),
        "ln1_g": jnp.ones((1, D_MODEL), jnp.float32),
        "ln1_b": jnp.zeros((1, D_MODEL), jnp.float32),
        "w1": init(keys[5], (D_MODEL, D_INNER)),
        "b1": init(keys[6], (1, D_INNER)),
        "w2": init(keys[7], (D_INNER, D_MODEL)),
        "b2": init(keys[8], (1, D_MODEL)),
        "ln2_g": jnp.ones((1, D_MODEL), jnp.float32),
        "ln2_b": jnp.zeros((1, D_MODEL), jnp.float32),
    }

    x = jax.random.normal(keys[9], (B, S, D_MODEL), dtype=jnp.float32)

    # One-time weight packing -- amortized over all calls, not in the hot path.
    weight_slab = jax.block_until_ready(prepare_params(params))

    run = jax.jit(encoder_layer)
    enc_out, enc_attn = run(x, weight_slab)
    enc_out = jax.block_until_ready(enc_out)
    enc_attn = jax.block_until_ready(enc_attn)

    ref_out, ref_attn = encoder_layer_ref(x, params)
    assert jnp.allclose(enc_out, ref_out, atol=2e-3, rtol=2e-3), "enc_output mismatch"
    assert jnp.allclose(enc_attn, ref_attn, atol=2e-3, rtol=2e-3), "attn mismatch"

    print("KERNEL_OK")
</pallas_src>

<mosaic_0001>
module attributes {stable_mosaic.version = 11 : i64} {
  func.func @encoder_layer_kernel(%arg0: memref<16x32xf32, #tpu.memory_space<vmem>>, %arg1: memref<392x128xf32, #tpu.memory_space<vmem>>, %arg2: memref<16x128xf32, #tpu.memory_space<vmem>>) attributes {dimension_semantics = [], scalar_prefetch = 0 : i64, scratch_operands = 0 : i64, tpu.core_type = #tpu.core_type<tc>} {
    %c0 = arith.constant 0 : index
    %c0_0 = arith.constant 0 : index
    %0 = vector.load %arg0[%c0, %c0_0] : memref<16x32xf32, #tpu.memory_space<vmem>>, vector<16x32xf32>
    %c0_1 = arith.constant 0 : index
    %c0_2 = arith.constant 0 : index
    %1 = vector.load %arg1[%c0_1, %c0_2] : memref<392x128xf32, #tpu.memory_space<vmem>>, vector<256x24xf32>
    %2 = vector.shape_cast %1 : vector<256x24xf32> to vector<8x32x24xf32>
    %c256 = arith.constant 256 : index
    %c0_3 = arith.constant 0 : index
    %3 = vector.load %arg1[%c256, %c0_3] : memref<392x128xf32, #tpu.memory_space<vmem>>, vector<32x32xf32>
    %c288 = arith.constant 288 : index
    %c0_4 = arith.constant 0 : index
    %4 = vector.load %arg1[%c288, %c0_4] : memref<392x128xf32, #tpu.memory_space<vmem>>, vector<32x64xf32>
    %c320 = arith.constant 320 : index
    %c0_5 = arith.constant 0 : index
    %5 = vector.load %arg1[%c320, %c0_5] : memref<392x128xf32, #tpu.memory_space<vmem>>, vector<64x32xf32>
    %c384 = arith.constant 384 : index
    %c0_6 = arith.constant 0 : index
    %6 = vector.load %arg1[%c384, %c0_6] : memref<392x128xf32, #tpu.memory_space<vmem>>, vector<8x128xf32>
    %7 = vector.extract_strided_slice %6 {offsets = [0, 0], sizes = [1, 32], strides = [1, 1]} : vector<8x128xf32> to vector<1x32xf32>
    %8 = vector.extract_strided_slice %6 {offsets = [1, 0], sizes = [1, 64], strides = [1, 1]} : vector<8x128xf32> to vector<1x64xf32>
    %9 = vector.extract_strided_slice %6 {offsets = [2, 0], sizes = [1, 32], strides = [1, 1]} : vector<8x128xf32> to vector<1x32xf32>
    %10 = vector.extract_strided_slice %6 {offsets = [3, 0], sizes = [1, 32], strides = [1, 1]} : vector<8x128xf32> to vector<1x32xf32>
    %11 = vector.extract_strided_slice %6 {offsets = [4, 0], sizes = [1, 32], strides = [1, 1]} : vector<8x128xf32> to vector<1x32xf32>
    %12 = vector.extract_strided_slice %6 {offsets = [5, 0], sizes = [1, 32], strides = [1, 1]} : vector<8x128xf32> to vector<1x32xf32>
    %13 = vector.extract_strided_slice %6 {offsets = [6, 0], sizes = [1, 32], strides = [1, 1]} : vector<8x128xf32> to vector<1x32xf32>
    %14 = vector.shape_cast %0 : vector<16x32xf32> to vector<2x8x32xf32>
    %15 = tpu.concatenate %14, %14, %14, %14 in 0 : vector<2x8x32xf32>, vector<2x8x32xf32>, vector<2x8x32xf32>, vector<2x8x32xf32> -> vector<8x8x32xf32>
    "tpu.trace_start"() <{level = 10 : i32, message = "nsc,ncd->nsd"}> : () -> ()
    %cst = arith.constant dense<0.000000e+00> : vector<8x8x24xf32>
    %16 = tpu.matmul %15, %2, %cst {dimension_numbers = #tpu.dot_dimension_numbers<[2], [1], [1], [2], [0, 0, 0, 1, 1, 2], [0], [0]>} : vector<8x8x32xf32>, vector<8x32x24xf32>, vector<8x8x24xf32> -> vector<8x8x24xf32>
    "tpu.trace_stop"() : () -> ()
    %17 = vector.extract_strided_slice %16 {offsets = [0, 0, 0], sizes = [8, 8, 8], strides = [1, 1, 1]} : vector<8x8x24xf32> to vector<8x8x8xf32>
    %18 = vector.extract_strided_slice %16 {offsets = [0, 0, 8], sizes = [8, 8, 8], strides = [1, 1, 1]} : vector<8x8x24xf32> to vector<8x8x8xf32>
    %19 = vector.extract_strided_slice %16 {offsets = [0, 0, 16], sizes = [8, 8, 8], strides = [1, 1, 1]} : vector<8x8x24xf32> to vector<8x8x8xf32>
    "tpu.trace_start"() <{level = 10 : i32, message = "nqd,nkd->nqk"}> : () -> ()
    %cst_7 = arith.constant dense<0.000000e+00> : vector<8x8x8xf32>
    %20 = tpu.matmul %17, %18, %cst_7 {dimension_numbers = #tpu.dot_dimension_numbers<[2], [2], [1], [1], [0, 0, 0, 1, 1, 1], [0], [0]>} : vector<8x8x8xf32>, vector<8x8x8xf32>, vector<8x8x8xf32> -> vector<8x8x8xf32>
    "tpu.trace_stop"() : () -> ()
    %cst_8 = arith.constant dense<0xFF800000> : vector<8x8xf32>
    %21 = vector.multi_reduction <maximumf>, %20, %cst_8 [2] : vector<8x8x8xf32> to vector<8x8xf32>
    %22 = vector.shape_cast %21 : vector<8x8xf32> to vector<8x8x1xf32>
    %23 = vector.broadcast %22 : vector<8x8x1xf32> to vector<8x8x8xf32>
    %24 = arith.subf %20, %23 : vector<8x8x8xf32>
    %25 = math.exp %24 : vector<8x8x8xf32>
    %cst_9 = arith.constant dense<0.000000e+00> : vector<8x8xf32>
    %26 = vector.multi_reduction <add>, %25, %cst_9 [2] : vector<8x8x8xf32> to vector<8x8xf32>
    %27 = vector.shape_cast %26 : vector<8x8xf32> to vector<8x8x1xf32>
    %28 = tpu.reciprocal %27 {approx = true} : vector<8x8x1xf32> -> vector<8x8x1xf32>
    %29 = vector.broadcast %28 : vector<8x8x1xf32> to vector<8x8x8xf32>
    %30 = arith.mulf %25, %29 : vector<8x8x8xf32>
    "tpu.trace_start"() <{level = 10 : i32, message = "nqk,nkd->nqd"}> : () -> ()
    %cst_10 = arith.constant dense<0.000000e+00> : vector<8x8x8xf32>
    %31 = tpu.matmul %30, %19, %cst_10 {dimension_numbers = #tpu.dot_dimension_numbers<[2], [1], [1], [2], [0, 0, 0, 1, 1, 2], [0], [0]>} : vector<8x8x8xf32>, vector<8x8x8xf32>, vector<8x8x8xf32> -> vector<8x8x8xf32>
    "tpu.trace_stop"() : () -> ()
    %32 = vector.shape_cast %31 : vector<8x8x8xf32> to vector<4x2x8x8xf32>
    %33 = vector.extract_strided_slice %32 {offsets = [0, 0, 0, 0], sizes = [1, 2, 8, 8], strides = [1, 1, 1, 1]} : vector<4x2x8x8xf32> to vector<1x2x8x8xf32>
    %34 = vector.shape_cast %33 : vector<1x2x8x8xf32> to vector<2x8x8xf32>
    %35 = vector.shape_cast %34 : vector<2x8x8xf32> to vector<16x8xf32>
    %36 = vector.extract_strided_slice %3 {offsets = [0, 0], sizes = [8, 32], strides = [1, 1]} : vector<32x32xf32> to vector<8x32xf32>
    %cst_11 = arith.constant dense<0.000000e+00> : vector<16x32xf32>
    %37 = tpu.matmul %35, %36, %cst_11 {dimension_numbers = #tpu.dot_dimension_numbers<[1], [0], [0], [1], [0, 0, 1, 1], [], []>} : vector<16x8xf32>, vector<8x32xf32>, vector<16x32xf32> -> vector<16x32xf32>
    %38 = vector.extract_strided_slice %32 {offsets = [1, 0, 0, 0], sizes = [1, 2, 8, 8], strides = [1, 1, 1, 1]} : vector<4x2x8x8xf32> to vector<1x2x8x8xf32>
    %39 = vector.shape_cast %38 : vector<1x2x8x8xf32> to vector<2x8x8xf32>
    %40 = vector.shape_cast %39 : vector<2x8x8xf32> to vector<16x8xf32>
    %41 = vector.extract_strided_slice %3 {offsets = [8, 0], sizes = [8, 32], strides = [1, 1]} : vector<32x32xf32> to vector<8x32xf32>
    %cst_12 = arith.constant dense<0.000000e+00> : vector<16x32xf32>
    %42 = tpu.matmul %40, %41, %cst_12 {dimension_numbers = #tpu.dot_dimension_numbers<[1], [0], [0], [1], [0, 0, 1, 1], [], []>} : vector<16x8xf32>, vector<8x32xf32>, vector<16x32xf32> -> vector<16x32xf32>
    %43 = arith.addf %37, %42 : vector<16x32xf32>
    %44 = vector.extract_strided_slice %32 {offsets = [2, 0, 0, 0], sizes = [1, 2, 8, 8], strides = [1, 1, 1, 1]} : vector<4x2x8x8xf32> to vector<1x2x8x8xf32>
    %45 = vector.shape_cast %44 : vector<1x2x8x8xf32> to vector<2x8x8xf32>
    %46 = vector.shape_cast %45 : vector<2x8x8xf32> to vector<16x8xf32>
    %47 = vector.extract_strided_slice %3 {offsets = [16, 0], sizes = [8, 32], strides = [1, 1]} : vector<32x32xf32> to vector<8x32xf32>
    %cst_13 = arith.constant dense<0.000000e+00> : vector<16x32xf32>
    %48 = tpu.matmul %46, %47, %cst_13 {dimension_numbers = #tpu.dot_dimension_numbers<[1], [0], [0], [1], [0, 0, 1, 1], [], []>} : vector<16x8xf32>, vector<8x32xf32>, vector<16x32xf32> -> vector<16x32xf32>
    %49 = arith.addf %43, %48 : vector<16x32xf32>
    %50 = vector.extract_strided_slice %32 {offsets = [3, 0, 0, 0], sizes = [1, 2, 8, 8], strides = [1, 1, 1, 1]} : vector<4x2x8x8xf32> to vector<1x2x8x8xf32>
    %51 = vector.shape_cast %50 : vector<1x2x8x8xf32> to vector<2x8x8xf32>
    %52 = vector.shape_cast %51 : vector<2x8x8xf32> to vector<16x8xf32>
    %53 = vector.extract_strided_slice %3 {offsets = [24, 0], sizes = [8, 32], strides = [1, 1]} : vector<32x32xf32> to vector<8x32xf32>
    %cst_14 = arith.constant dense<0.000000e+00> : vector<16x32xf32>
    %54 = tpu.matmul %52, %53, %cst_14 {dimension_numbers = #tpu.dot_dimension_numbers<[1], [0], [0], [1], [0, 0, 1, 1], [], []>} : vector<16x8xf32>, vector<8x32xf32>, vector<16x32xf32> -> vector<16x32xf32>
    %55 = arith.addf %49, %54 : vector<16x32xf32>
    %56 = vector.broadcast %7 : vector<1x32xf32> to vector<16x32xf32>
    %57 = arith.addf %55, %56 : vector<16x32xf32>
    %58 = arith.addf %57, %0 : vector<16x32xf32>
    %cst_15 = arith.constant dense<0.000000e+00> : vector<16xf32>
    %59 = vector.multi_reduction <add>, %58, %cst_15 [1] : vector<16x32xf32> to vector<16xf32>
    %60 = vector.shape_cast %59 : vector<16xf32> to vector<16x1xf32>
    %cst_16 = arith.constant 3.200000e+01 : f32
    %61 = vector.broadcast %cst_16 : f32 to vector<16x1xf32>
    %62 = arith.divf %60, %61 : vector<16x1xf32>
    %63 = vector.broadcast %62 : vector<16x1xf32> to vector<16x32xf32>
    %64 = arith.subf %58, %63 : vector<16x32xf32>
    %65 = arith.mulf %64, %64 : vector<16x32xf32>
    %cst_17 = arith.constant dense<0.000000e+00> : vector<16xf32>
    %66 = vector.multi_reduction <add>, %65, %cst_17 [1] : vector<16x32xf32> to vector<16xf32>
    %67 = vector.shape_cast %66 : vector<16xf32> to vector<16x1xf32>
    %cst_18 = arith.constant 3.200000e+01 : f32
    %68 = vector.broadcast %cst_18 : f32 to vector<16x1xf32>
    %69 = arith.divf %67, %68 : vector<16x1xf32>
    %70 = vector.broadcast %62 : vector<16x1xf32> to vector<16x32xf32>
    %71 = arith.subf %58, %70 : vector<16x32xf32>
    %cst_19 = arith.constant 9.99999997E-7 : f32
    %72 = vector.broadcast %cst_19 : f32 to vector<16x1xf32>
    %73 = arith.addf %69, %72 : vector<16x1xf32>
    %74 = math.rsqrt %73 : vector<16x1xf32>
    %75 = vector.broadcast %74 : vector<16x1xf32> to vector<16x32xf32>
    %76 = arith.mulf %71, %75 : vector<16x32xf32>
    %77 = vector.broadcast %10 : vector<1x32xf32> to vector<16x32xf32>
    %78 = arith.mulf %76, %77 : vector<16x32xf32>
    %79 = vector.broadcast %11 : vector<1x32xf32> to vector<16x32xf32>
    %80 = arith.addf %78, %79 : vector<16x32xf32>
    %cst_20 = arith.constant dense<0.000000e+00> : vector<16x64xf32>
    %81 = tpu.matmul %80, %4, %cst_20 {dimension_numbers = #tpu.dot_dimension_numbers<[1], [0], [0], [1], [0, 0, 1, 1], [], []>} : vector<16x32xf32>, vector<32x64xf32>, vector<16x64xf32> -> vector<16x64xf32>
    %82 = vector.broadcast %8 : vector<1x64xf32> to vector<16x64xf32>
    %83 = arith.addf %81, %82 : vector<16x64xf32>
    %cst_21 = arith.constant 0.000000e+00 : f32
    %84 = vector.broadcast %cst_21 : f32 to vector<16x64xf32>
    %85 = arith.maximumf %83, %84 : vector<16x64xf32>
    %cst_22 = arith.constant dense<0.000000e+00> : vector<16x32xf32>
    %86 = tpu.matmul %85, %5, %cst_22 {dimension_numbers = #tpu.dot_dimension_numbers<[1], [0], [0], [1], [0, 0, 1, 1], [], []>} : vector<16x64xf32>, vector<64x32xf32>, vector<16x32xf32> -> vector<16x32xf32>
    %87 = vector.broadcast %9 : vector<1x32xf32> to vector<16x32xf32>
    %88 = arith.addf %86, %87 : vector<16x32xf32>
    %89 = arith.addf %88, %80 : vector<16x32xf32>
    %cst_23 = arith.constant dense<0.000000e+00> : vector<16xf32>
    %90 = vector.multi_reduction <add>, %89, %cst_23 [1] : vector<16x32xf32> to vector<16xf32>
    %91 = vector.shape_cast %90 : vector<16xf32> to vector<16x1xf32>
    %cst_24 = arith.constant 3.200000e+01 : f32
    %92 = vector.broadcast %cst_24 : f32 to vector<16x1xf32>
    %93 = arith.divf %91, %92 : vector<16x1xf32>
    %94 = vector.broadcast %93 : vector<16x1xf32> to vector<16x32xf32>
    %95 = arith.subf %89, %94 : vector<16x32xf32>
    %96 = arith.mulf %95, %95 : vector<16x32xf32>
    %cst_25 = arith.constant dense<0.000000e+00> : vector<16xf32>
    %97 = vector.multi_reduction <add>, %96, %cst_25 [1] : vector<16x32xf32> to vector<16xf32>
    %98 = vector.shape_cast %97 : vector<16xf32> to vector<16x1xf32>
    %cst_26 = arith.constant 3.200000e+01 : f32
    %99 = vector.broadcast %cst_26 : f32 to vector<16x1xf32>
    %100 = arith.divf %98, %99 : vector<16x1xf32>
    %101 = vector.broadcast %93 : vector<16x1xf32> to vector<16x32xf32>
    %102 = arith.subf %89, %101 : vector<16x32xf32>
    %cst_27 = arith.constant 9.99999997E-7 : f32
    %103 = vector.broadcast %cst_27 : f32 to vector<16x1xf32>
    %104 = arith.addf %100, %103 : vector<16x1xf32>
    %105 = math.rsqrt %104 : vector<16x1xf32>
    %106 = vector.broadcast %105 : vector<16x1xf32> to vector<16x32xf32>
    %107 = arith.mulf %102, %106 : vector<16x32xf32>
    %108 = vector.broadcast %12 : vector<1x32xf32> to vector<16x32xf32>
    %109 = arith.mulf %107, %108 : vector<16x32xf32>
    %110 = vector.broadcast %13 : vector<1x32xf32> to vector<16x32xf32>
    %111 = arith.addf %109, %110 : vector<16x32xf32>
    %112 = vector.shape_cast %30 : vector<8x8x8xf32> to vector<4x2x8x8xf32>
    %113 = vector.extract_strided_slice %112 {offsets = [0, 0, 0, 0], sizes = [1, 2, 8, 8], strides = [1, 1, 1, 1]} : vector<4x2x8x8xf32> to vector<1x2x8x8xf32>
    %114 = vector.shape_cast %113 : vector<1x2x8x8xf32> to vector<2x8x8xf32>
    %115 = vector.shape_cast %114 : vector<2x8x8xf32> to vector<16x8xf32>
    %116 = vector.extract_strided_slice %112 {offsets = [1, 0, 0, 0], sizes = [1, 2, 8, 8], strides = [1, 1, 1, 1]} : vector<4x2x8x8xf32> to vector<1x2x8x8xf32>
    %117 = vector.shape_cast %116 : vector<1x2x8x8xf32> to vector<2x8x8xf32>
    %118 = vector.shape_cast %117 : vector<2x8x8xf32> to vector<16x8xf32>
    %119 = vector.extract_strided_slice %112 {offsets = [2, 0, 0, 0], sizes = [1, 2, 8, 8], strides = [1, 1, 1, 1]} : vector<4x2x8x8xf32> to vector<1x2x8x8xf32>
    %120 = vector.shape_cast %119 : vector<1x2x8x8xf32> to vector<2x8x8xf32>
    %121 = vector.shape_cast %120 : vector<2x8x8xf32> to vector<16x8xf32>
    %122 = vector.extract_strided_slice %112 {offsets = [3, 0, 0, 0], sizes = [1, 2, 8, 8], strides = [1, 1, 1, 1]} : vector<4x2x8x8xf32> to vector<1x2x8x8xf32>
    %123 = vector.shape_cast %122 : vector<1x2x8x8xf32> to vector<2x8x8xf32>
    %124 = vector.shape_cast %123 : vector<2x8x8xf32> to vector<16x8xf32>
    %cst_28 = arith.constant 0.000000e+00 : f32
    %125 = vector.broadcast %cst_28 : f32 to vector<16x64xf32>
    %126 = tpu.concatenate %111, %115, %118, %121, %124, %125 in 1 : vector<16x32xf32>, vector<16x8xf32>, vector<16x8xf32>, vector<16x8xf32>, vector<16x8xf32>, vector<16x64xf32> -> vector<16x128xf32>
    %c0_29 = arith.constant 0 : index
    %c0_30 = arith.constant 0 : index
    %127 = vector.load %arg2[%c0_29, %c0_30] : memref<16x128xf32, #tpu.memory_space<vmem>>, vector<16x128xf32>
    tpu.vector_store %arg2[%c0_29, %c0_30], %126 {strides = array<i32>} : memref<16x128xf32, #tpu.memory_space<vmem>>, vector<16x128xf32>,
    return
  }
}

</mosaic_0001>

<bundles_post_ra>
// kernel: encoder_layer.1
= control target key start
LH: loop header
LB: loop body
LE: loop exit
PB: predicated region body
PF: predicated region fallthrough
CT: control target
= control target key end

     0   :  { %7 = vsyncpa [#allocation3], 0  ;;  %s3477_s0 = inlined_call_operand.hbm [shape: f32[16,32], index: 0, kind: input, shape index: {}]   ;;  %s3478_s1 = inlined_call_operand.hbm [shape: f32[392,128], index: 1, kind: input, shape index: {}]   ;;  %s3479_s2 = inlined_call_operand.vmem [shape: f32[16,128], index: 2, kind: output, shape index: {}]  }
   0x1   :  { %8 = vsyncpa [#allocation5], 0  ;;  %s3144_s9 = smov [#allocation2]   ;;  %s3096_s13 = scalar_lea.hbm %s3477_s0, 256 }
   0x2   :  { %s14_s10 = sshll.u32 %s3144_s9, 4  ;;  %p3097_p0 = scmp.ne.s32.totalorder %s3477_s0, %s3096_s13  ;;  %s15_s10 = int_to_ptr.vmem [resolvable:$true] %s14_s10 }
   0x3   :  { %p3100_p1 = scmp.lt.u32.totalorder %s3096_s13, %s3477_s0 }
   0x5   :  { %p3102_p2 = pnand %p3100_p1, %p3097_p0 }
   0x7   :  { %3105 = shalt.err (!%p3102_p2)
}
   0x8   :  { %s3106_s18 = scalar_lea.vmem %s15_s10, 256  ;;  %p3111_p4 = scmp.lt.s32.totalorder %s15_s10, %s15_s10 }
   0x9   :  { %p3107_p3 = scmp.ne.s32.totalorder %s15_s10, %s3106_s18  ;;  %p3112_p5 = scmp.lt.s32.totalorder %s3106_s18, %s3106_s18 }
   0xb   :  { %p3113_p6 = por %p3112_p5, %p3111_p4 }
   0xd   :  { %p3114_p7 = pnand %p3113_p6, %p3107_p3 }
   0xf   :  { %3117 = shalt.err (!%p3114_p7)
}
  0x10   :  { %s3145_s19 = smov 128   ;;  %s3146_s20 = smov 8  }
  0x11   :  { %20 = dma.hbm_to_vmem [thread:$0]  %s3477_s0, 256, %s15_s10, [#allocation3], %s3145_s19, %s3145_s19, %s3146_s20  }
  0x12   :  { %s3147_s23 = smov [#allocation4]   ;;  %s3118_s27 = scalar_lea.hbm %s3478_s1, 6272 }
  0x13   :  { %s26_s24 = sshll.u32 %s3147_s23, 4  ;;  %p3119_p8 = scmp.ne.s32.totalorder %s3478_s1, %s3118_s27  ;;  %s27_s24 = int_to_ptr.vmem [resolvable:$true] %s26_s24 }
  0x14   :  { %p3122_p9 = scmp.lt.u32.totalorder %s3118_s27, %s3478_s1 }
  0x16   :  { %p3124_p10 = pnand %p3122_p9, %p3119_p8 }
  0x18   :  { %3127 = shalt.err (!%p3124_p10)
}
  0x19   :  { %s3128_s4 = scalar_lea.vmem %s27_s24, 6272  ;;  %p3133_p12 = scmp.lt.s32.totalorder %s27_s24, %s27_s24 }
  0x1a   :  { %p3129_p11 = scmp.ne.s32.totalorder %s27_s24, %s3128_s4  ;;  %p3134_p13 = scmp.lt.s32.totalorder %s3128_s4, %s3128_s4 }
  0x1c   :  { %p3135_p0 = por %p3134_p13, %p3133_p12 }
  0x1e   :  { %p3136_p1 = pnand %p3135_p0, %p3129_p11 }
  0x20   :  { %3139 = shalt.err (!%p3136_p1)
}
  0x21   :  { %32 = dma.hbm_to_vmem [thread:$0]  %s3478_s1, 6272, %s27_s24, [#allocation5], %s3145_s19, %s3145_s19, %s3146_s20  }
  0x22   :  { %3140 = dma.done.wait [#allocation3], 256  }
  0x23   :  { %3141 = vsyncadd [#allocation3], 4294967040 }
  0x24   :  { %3142 = dma.done.wait [#allocation5], 6272  }
  0x25   :  { %3143 = vsyncadd [#allocation5], 4294961024  ;;  %v3148_v0 = vmov 0.0|0.0   ;;  %vm3149_vm0 = vmmov 0   ;;  %v3150_v1 = vmov 0.0   ;;  %v41_v2 = vld [vmem:[#allocation4] sm:$0xff] }
  0x26   :  { %2965 = vmatprep.subr.bf16.mxu0 %v3148_v0  ;;  %2971 = vmatprep.subr.bf16.mxu1 %v3148_v0  ;;  %v42_v3 = vld [vmem:[#allocation4 + $0x8] sm:$0xff]  ;;  %v45_v4 = vld [vmem:[#allocation4 + $0x20] sm:$0xff]  ;;  %v43_v7 = vld [vmem:[#allocation4 + $0x10] sm:$0xff]  ;;  %vm90_vm1 = vcmask 261120   ;;  %s3151_s1 = smov 120   ;;  %s3152_s6 = smov 112  }
  0x27   :  { %2755 = vmatprep.mubr.msk.f32.mxu0 %vm3149_vm0, %v3150_v1  ;;  %2766 = vmatprep.mubr.msk.f32.mxu1 %vm3149_vm0, %v3150_v1  ;;  %v2966_v5 = vpack.c.bf16 %v42_v3, %v41_v2  ;;  %v46_v6 = vld [vmem:[#allocation4 + $0x28] sm:$0xff]  ;;  %v44_v8 = vld [vmem:[#allocation4 + $0x18] sm:$0xff]  ;;  %v47_v10 = vld [vmem:[#allocation4 + $0x30] sm:$0xff]  ;;  %vm660_vm2 = vcmask 64512   ;;  %vm2436_vm3 = vcmask 523264   ;;  %s3153_s7 = smov 32  }
  0x28   :  { %v2972_v9 = vpack.c.bf16 %v46_v6, %v45_v4  ;;  %v48_v11 = vld [vmem:[#allocation4 + $0x38] sm:$0xff]  ;;  %v2969_v12 = vpack.c.bf16 %v44_v8, %v43_v7  ;;  %v49_v14 = vld [vmem:[#allocation4 + $0x40] sm:$0xff]  ;;  %v50_v15 = vld [vmem:[#allocation4 + $0x48] sm:$0xff]  ;;  %s3154_s8 = smov 40   ;;  %s3155_s9 = smov 48   ;;  %vm2584_vm4 = vcmask 326656  }
  0x29   :  { %2967 = vmatpush3.bf16.msra.mxu0 %v2966_v5  ;;  %v2975_v13 = vpack.c.bf16 %v48_v11, %v47_v10  ;;  %v53_v16 = vld [vmem:[#allocation4 + $0x60] sm:$0xff]  ;;  %v54_v17 = vld [vmem:[#allocation4 + $0x68] sm:$0xff]  ;;  %v3204_v18 = vld [vmem:[#allocation2] sm:$0xff]  ;;  %v2978_v19 = vpack.c.bf16 %v50_v15, %v49_v14  ;;  %s3156_s10 = smov 56   ;;  %vm2587_vm5 = vcmask 392192   ;;  %vm2590_vm6 = vcmask 457728  }
  0x2a   :  { %2973 = vmatpush3.bf16.msra.mxu1 %v2972_v9  ;;  %2968 = vmatprep.subr.bf16.mxu0 %v3148_v0  ;;  %v3207_v20 = vld [vmem:[#allocation2 + $0x8] sm:$0xff]  ;;  %v2984_v21 = vpack.c.bf16 %v54_v17, %v53_v16  ;;  %v51_v22 = vld [vmem:[#allocation4 + $0x50] sm:$0xff]  ;;  %v57_v28 = vld [vmem:[#allocation4 + $0x80] sm:$0xff] }
  0x2b   :  { %2974 = vmatprep.subr.bf16.mxu1 %v3148_v0  ;;  %v52_v23 = vld [vmem:[#allocation4 + $0x58] sm:$0xff]  ;;  %v55_v24 = vld [vmem:[#allocation4 + $0x70] sm:$0xff]  ;;  %v58_v29 = vld [vmem:[#allocation4 + $0x88] sm:$0xff] }
  0x2c   :  { %v56_v25 = vld [vmem:[#allocation4 + $0x78] sm:$0xff]  ;;  %v2981_v26 = vpack.c.bf16 %v52_v23, %v51_v22  ;;  %v61_v30 = vld [vmem:[#allocation4 + $0xa0] sm:$0xff]  ;;  %v62_v31 = vld [vmem:[#allocation4 + $0xa8] sm:$0xff]  ;;  %v2990_v32 = vpack.c.bf16 %v58_v29, %v57_v28 }
  0x2d   :  { %2970 = vmatpush3.bf16.msra.mxu0 %v2969_v12  ;;  %v2987_v27 = vpack.c.bf16 %v56_v25, %v55_v24  ;;  %v2996_v33 = vpack.c.bf16 %v62_v31, %v61_v30  ;;  %v59_v34 = vld [vmem:[#allocation4 + $0x90] sm:$0xff]  ;;  %v60_v35 = vld [vmem:[#allocation4 + $0x98] sm:$0xff]  ;;  %v65_v40 = vld [vmem:[#allocation4 + $0xc0] sm:$0xff] }
  0x2e   :  { %2976 = vmatpush3.bf16.msra.mxu1 %v2975_v13  ;;  %2977 = vmatprep.subr.bf16.mxu0 %v3148_v0  ;;  %v63_v36 = vld [vmem:[#allocation4 + $0xb0] sm:$0xff]  ;;  %v64_v37 = vld [vmem:[#allocation4 + $0xb8] sm:$0xff]  ;;  %v2993_v38 = vpack.c.bf16 %v60_v35, %v59_v34  ;;  %v66_v41 = vld [vmem:[#allocation4 + $0xc8] sm:$0xff] }
  0x2f   :  { %2983 = vmatprep.subr.bf16.mxu1 %v3148_v0  ;;  %v2999_v39 = vpack.c.bf16 %v64_v37, %v63_v36  ;;  %v69_v42 = vld [vmem:[#allocation4 + $0xe0] sm:$0xff]  ;;  %v70_v43 = vld [vmem:[#allocation4 + $0xe8] sm:$0xff]  ;;  %v3002_v44 = vpack.c.bf16 %v66_v41, %v65_v40  ;;  %v67_v46 = vld [vmem:[#allocation4 + $0xd0] sm:$0xff] }
  0x30   :  { %2756 = vmatmul.mubr.msk.f32.vlgmr.msra.gmra.mrb[0].mxu0 %vm90_vm1, %v3204_v18  ;;  %v3008_v45 = vpack.c.bf16 %v70_v43, %v69_v42  ;;  %v68_v47 = vld [vmem:[#allocation4 + $0xd8] sm:$0xff]  ;;  %v71_v48 = vld [vmem:[#allocation4 + $0xf0] sm:$0xff] }
  0x31   :  { %2767 = vmatmul.mubr.msk.f32.vlgmr.msra.gmra.mrb[0].mxu1 %vm90_vm1, %v3207_v20  ;;  %2979 = vmatpush3.bf16.msra.mxu0 %v2978_v19  ;;  %v72_v49 = vld [vmem:[#allocation4 + $0xf8] sm:$0xff]  ;;  %v3005_v50 = vpack.c.bf16 %v68_v47, %v67_v46 }
  0x32   :  { %2985 = vmatpush3.bf16.msra.mxu1 %v2984_v21  ;;  %2980 = vmatprep.subr.bf16.mxu0 %v3148_v0  ;;  %v3011_v51 = vpack.c.bf16 %v72_v49, %v71_v48 }
  0x33   :  { %2986 = vmatprep.subr.bf16.mxu1 %v3148_v0  ;;  %2777 = vmatprep.mubr.msk.f32.mxu0 %vm3149_vm0, %v3150_v1 }
  0x34   :  { %2788 = vmatprep.mubr.msk.f32.mxu1 %vm3149_vm0, %v3150_v1 }
  0x35   :  { %2982 = vmatpush3.bf16.msra.mxu0 %v2981_v26 }
  0x36   :  { %2988 = vmatpush3.bf16.msra.mxu1 %v2987_v27  ;;  %2989 = vmatprep.subr.bf16.mxu0 %v3148_v0 }
  0x37   :  { %2995 = vmatprep.subr.bf16.mxu1 %v3148_v0 }
  0x38   :  { %2778 = vmatmul.mubr.msk.f32.vlgmr.msra.gmra.mrb[2].mxu0 %vm90_vm1, %v3204_v18 }
  0x39   :  { %2789 = vmatmul.mubr.msk.f32.vlgmr.msra.gmra.mrb[2].mxu1 %vm90_vm1, %v3207_v20  ;;  %2991 = vmatpush3.bf16.msra.mxu0 %v2990_v32 }
  0x3a   :  { %2997 = vmatpush3.bf16.msra.mxu1 %v2996_v33  ;;  %2992 = vmatprep.subr.bf16.mxu0 %v3148_v0 }
  0x3b   :  { %2998 = vmatprep.subr.bf16.mxu1 %v3148_v0  ;;  %2799 = vmatprep.mubr.msk.f32.mxu0 %vm3149_vm0, %v3150_v1 }
  0x3c   :  { %2810 = vmatprep.mubr.msk.f32.mxu1 %vm3149_vm0, %v3150_v1 }
  0x3d   :  { %2994 = vmatpush3.bf16.msra.mxu0 %v2993_v38 }
  0x3e   :  { %3000 = vmatpush3.bf16.msra.mxu1 %v2999_v39  ;;  %3001 = vmatprep.subr.bf16.mxu0 %v3148_v0 }
  0x3f   :  { %3007 = vmatprep.subr.bf16.mxu1 %v3148_v0 }
  0x40   :  { %2800 = vmatmul.mubr.msk.f32.vlgmr.msra.gmra.mrb[4].mxu0 %vm90_vm1, %v3204_v18 }
  0x41   :  { %2811 = vmatmul.mubr.msk.f32.vlgmr.msra.gmra.mrb[4].mxu1 %vm90_vm1, %v3207_v20  ;;  %3003 = vmatpush3.bf16.msra.mxu0 %v3002_v44 }
  0x42   :  { %3009 = vmatpush3.bf16.msra.mxu1 %v3008_v45  ;;  %3004 = vmatprep.subr.bf16.mxu0 %v3148_v0 }
  0x43   :  { %3010 = vmatprep.subr.bf16.mxu1 %v3148_v0  ;;  %2821 = vmatprep.mubr.msk.f32.mxu0 %vm3149_vm0, %v3150_v1 }
  0x44   :  { %2832 = vmatprep.mubr.msk.f32.mxu1 %vm3149_vm0, %v3150_v1 }
  0x45   :  { %3006 = vmatpush3.bf16.msra.mxu0 %v3005_v50 }
  0x46   :  { %3012 = vmatpush3.bf16.msra.mxu1 %v3011_v51  ;;  %2835 = vmatprep.subr.mxu0 %v3150_v1 }
  0x47   :  { %2850 = vmatprep.subr.mxu1 %v3150_v1 }
  0x48   :  { %2822 = vmatmul.mubr.msk.f32.vlgmr.msra.gmra.mrb[6].mxu0 %vm90_vm1, %v3204_v18 }
  0x49   :  { %2833 = vmatmul.mubr.msk.f32.vlgmr.msra.gmra.mrb[6].mxu1 %vm90_vm1, %v3207_v20  ;;  %2837 = vmatprep.mubr.msk.f32.mxu0 %vm3149_vm0, %v3150_v1 }
  0x4a   :  { %2852 = vmatprep.mubr.msk.f32.mxu1 %vm3149_vm0, %v3150_v1 }
 0x103   :  { %v160_v52 = vpop.f32.mrb[0].mxu0 }
 0x104   :  { %658 = vrot.lane.b32.xlu0 %v160_v52, %s3151_s1  ;;  %v2757_v53 = vpop.f32.mrb[1].mxu0  ;;  %v3254_v54 = vpop.f32.mrb[0].mxu1 }
 0x105   :  { %v2768_v55 = vpop.f32.mrb[1].mxu1 }
 0x108   :  { %736 = vrot.lane.b32.xlu0 %v3254_v54, %s3151_s1 }
 0x10b   :  { %v3257_v56 = vpop.f32.mrb[2].mxu0 }
 0x10c   :  { %813 = vrot.lane.b32.xlu1 %v3257_v56, %s3151_s1  ;;  %v2779_v57 = vpop.f32.mrb[3].mxu0  ;;  %v3260_v58 = vpop.f32.mrb[2].mxu1 }
 0x10d   :  { %v2790_v59 = vpop.f32.mrb[3].mxu1 }
 0x110   :  { %890 = vrot.lane.b32.xlu1 %v3260_v58, %s3151_s1 }
 0x113   :  { %v3263_v60 = vpop.f32.mrb[4].mxu0 }
 0x114   :  { %v3265_v61 = vpop.f32.mrb[4].mxu1  ;;  %967 = vrot.lane.b32.xlu0 %v3263_v60, %s3151_s1  ;;  %v2801_v62 = vpop.f32.mrb[5].mxu0 }
 0x115   :  { %1044 = vrot.lane.b32.xlu1 %v3265_v61, %s3151_s1  ;;  %v2812_v63 = vpop.f32.mrb[5].mxu1 }
 0x11b   :  { %v3269_v0 = vpop.f32.mrb[6].mxu0 }
 0x11c   :  { %v3271_v2 = vpop.f32.mrb[6].mxu1  ;;  %1121 = vrot.lane.b32.xlu0 %v3269_v0, %s3151_s1  ;;  %v2823_v3 = vpop.f32.mrb[7].mxu0 }
 0x11d   :  { %1198 = vrot.lane.b32.xlu1 %v3271_v2, %s3151_s1  ;;  %v2834_v4 = vpop.f32.mrb[7].mxu1 }
 0x121   :  { %1362 = vrot.lane.b32.xlu1 %v160_v52, %s3152_s6 }
 0x176   :  { %v659_v5 = vpop.permute.xlu0 %658 }
 0x177   :  { %2836 = vmatpush3.xpose.msk.msra.mxu0 %vm660_vm2, %v659_v5 }
 0x178   :  { %2840 = vmatprep.subr.mxu0 %v3150_v1 }
 0x17a   :  { %2838 = vmatmul.mubr.msk.f32.vlgmr.msra.gmra.mrb[8].mxu0 %vm660_vm2, %v160_v52  ;;  %v737_v6 = vpop.permute.xlu0 %736 }
 0x17b   :  { %2841 = vmatpush3.xpose.msk.msra.mxu0 %vm660_vm2, %v737_v6  ;;  %2842 = vmatprep.mubr.msk.f32.mxu0 %vm3149_vm0, %v3150_v1 }
 0x17c   :  { %2845 = vmatprep.subr.mxu0 %v3150_v1 }
 0x17e   :  { %2843 = vmatmul.mubr.msk.f32.vlgmr.msra.gmra.mrb[10].mxu0 %vm660_vm2, %v3254_v54  ;;  %v814_v7 = vpop.permute.xlu1 %813 }
 0x17f   :  { %2846 = vmatpush3.xpose.msk.msra.mxu0 %vm660_vm2, %v814_v7  ;;  %2847 = vmatprep.mubr.msk.f32.mxu0 %vm3149_vm0, %v3150_v1 }
 0x180   :  { %2855 = vmatprep.subr.mxu0 %v3150_v1 }
 0x182   :  { %2848 = vmatmul.mubr.msk.f32.vlgmr.msra.gmra.mrb[12].mxu0 %vm660_vm2, %v3257_v56  ;;  %v891_v8 = vpop.permute.xlu1 %890 }
 0x183   :  { %2851 = vmatpush3.xpose.msk.msra.mxu1 %vm660_vm2, %v891_v8  ;;  %2857 = vmatprep.mubr.msk.f32.mxu0 %vm3149_vm0, %v3150_v1 }
 0x184   :  { %2860 = vmatprep.subr.mxu1 %v3150_v1 }
 0x186   :  { %2853 = vmatmul.mubr.msk.f32.vlgmr.msra.gmra.mrb[8].mxu1 %vm660_vm2, %v3260_v58  ;;  %v968_v9 = vpop.permute.xlu0 %967 }
 0x187   :  { %v1045_v10 = vpop.permute.xlu1 %1044  ;;  %2856 = vmatpush3.xpose.msk.msra.mxu0 %vm660_vm2, %v968_v9  ;;  %2862 = vmatprep.mubr.msk.f32.mxu1 %vm3149_vm0, %v3150_v1 }
 0x188   :  { %2861 = vmatpush3.xpose.msk.msra.mxu1 %vm660_vm2, %v1045_v10  ;;  %2865 = vmatprep.subr.mxu0 %v3150_v1 }
 0x189   :  { %2870 = vmatprep.subr.mxu1 %v3150_v1 }
 0x18a   :  { %2858 = vmatmul.mubr.msk.f32.vlgmr.msra.gmra.mrb[14].mxu0 %vm660_vm2, %v3263_v60 }
 0x18b   :  { %2863 = vmatmul.mubr.msk.f32.vlgmr.msra.gmra.mrb[10].mxu1 %vm660_vm2, %v3265_v61  ;;  %2867 = vmatprep.mubr.msk.f32.mxu0 %vm3149_vm0, %v3150_v1 }
 0x18c   :  { %2872 = vmatprep.mubr.msk.f32.mxu1 %vm3149_vm0, %v3150_v1 }
 0x18e   :  { %v1122_v11 = vpop.permute.xlu0 %1121 }
 0x18f   :  { %v1199_v12 = vpop.permute.xlu1 %1198  ;;  %2866 = vmatpush3.xpose.msk.msra.mxu0 %vm660_vm2, %v1122_v11 }
 0x190   :  { %2871 = vmatpush3.xpose.msk.msra.mxu1 %vm660_vm2, %v1199_v12  ;;  %2875 = vmatprep.subr.mxu0 %v3150_v1 }
 0x191   :  { %2880 = vmatprep.subr.mxu1 %v3150_v1 }
 0x192   :  { %2868 = vmatmul.mubr.msk.f32.vlgmr.msra.gmra.mrb[16].mxu0 %vm660_vm2, %v3269_v0 }
 0x193   :  { %2873 = vmatmul.mubr.msk.f32.vlgmr.msra.gmra.mrb[12].mxu1 %vm660_vm2, %v3271_v2  ;;  %v1363_v13 = vpop.permute.xlu1 %1362  ;;  %2877 = vmatprep.mubr.msk.f32.mxu0 %vm3149_vm0, %v3150_v1 }
 0x194   :  { %2876 = vmatpush3.msra.mxu0 %v1363_v13  ;;  %2882 = vmatprep.mubr.msk.f32.mxu1 %vm3149_vm0, %v3150_v1 }
 0x195   :  { %2885 = vmatprep.subr.mxu0 %v3150_v1 }
 0x24d   :  { %v731_v14 = vpop.f32.mrb[8].mxu0 }
 0x24e   :  { %v2839_v15 = vpop.f32.mrb[9].mxu0  ;;  %v1274_v16 = vsel %vm660_vm2, %v731_v14, -inf }
 0x24f   :  { %1275 = vmax.xlane.f32.xlu0 %v1274_v16 }
 0x251   :  { %v808_v17 = vpop.f32.mrb[10].mxu0 }
 0x252   :  { %v2844_v19 = vpop.f32.mrb[11].mxu0  ;;  %v1277_v21 = vsel %vm660_vm2, %v808_v17, -inf }
 0x253   :  { %1278 = vmax.xlane.f32.xlu1 %v1277_v21 }
 0x255   :  { %v885_v22 = vpop.f32.mrb[12].mxu0 }
 0x256   :  { %v2849_v23 = vpop.f32.mrb[13].mxu0  ;;  %v1280_v24 = vsel %vm660_vm2, %v885_v22, -inf }
 0x257   :  { %1281 = vmax.xlane.f32.xlu0 %v1280_v24 }
 0x259   :  { %v962_v25 = vpop.f32.mrb[8].mxu1 }
 0x25a   :  { %v2854_v26 = vpop.f32.mrb[9].mxu1  ;;  %v1283_v27 = vsel %vm660_vm2, %v962_v25, -inf }
 0x25b   :  { %1284 = vmax.xlane.f32.xlu0 %v1283_v27 }
 0x25d   :  { %v1039_v28 = vpop.f32.mrb[14].mxu0 }
 0x25e   :  { %v1116_v29 = vpop.f32.mrb[10].mxu1  ;;  %v2859_v30 = vpop.f32.mrb[15].mxu0  ;;  %v1286_v31 = vsel %vm660_vm2, %v1039_v28, -inf }
 0x25f   :  { %v2864_v32 = vpop.f32.mrb[11].mxu1  ;;  %v1289_v33 = vsel %vm660_vm2, %v1116_v29, -inf  ;;  %1287 = vmax.xlane.f32.xlu1 %v1286_v31 }
 0x260   :  { %1290 = vmax.xlane.f32.xlu0 %v1289_v33 }
 0x265   :  { %v1193_v34 = vpop.f32.mrb[16].mxu0 }
 0x266   :  { %v1270_v35 = vpop.f32.mrb[12].mxu1  ;;  %v2869_v36 = vpop.f32.mrb[17].mxu0  ;;  %v1292_v37 = vsel %vm660_vm2, %v1193_v34, -inf }
 0x267   :  { %v2874_v38 = vpop.f32.mrb[13].mxu1  ;;  %v1295_v39 = vsel %vm660_vm2, %v1270_v35, -inf  ;;  %1293 = vmax.xlane.f32.xlu1 %v1292_v37 }
 0x268   :  { %1296 = vmax.xlane.f32.xlu0 %v1295_v39 }
 0x278   :  { %1514 = vrot.lane.b32.xlu1 %v3257_v56, %s3152_s6 }
 0x27e   :  { %1438 = vrot.lane.b32.xlu0 %v3254_v54, %s3152_s6 }
 0x2dc   :  { %v1276_v40 = vpop.xlane.xlu0 %1275 }
 0x2dd   :  { %v1298_v41 = vsub.f32 %v731_v14, %v1276_v40 }
 0x2df   :  { %v1306_v42 = vmul.f32 1.442695, %v1298_v41 }
 0x2e0   :  { %v1279_v43 = vpop.xlane.xlu1 %1278 }
 0x2e1   :  { %3056 = vpow2.f32 %v1306_v42  ;;  %v1299_v44 = vsub.f32 %v808_v17, %v1279_v43 }
 0x2e3   :  { %v1308_v45 = vmul.f32 1.442695, %v1299_v44 }
 0x2e4   :  { %v1282_v46 = vpop.xlane.xlu0 %1281 }
 0x2e5   :  { %3058 = vpow2.f32 %v1308_v45  ;;  %v1300_v47 = vsub.f32 %v885_v22, %v1282_v46 }
 0x2e7   :  { %v1310_v48 = vmul.f32 1.442695, %v1300_v47 }
 0x2e8   :  { %v1285_v49 = vpop.xlane.xlu0 %1284 }
 0x2e9   :  { %3060 = vpow2.f32 %v1310_v48  ;;  %v1301_v50 = vsub.f32 %v962_v25, %v1285_v49 }
 0x2eb   :  { %v3057_v51 = vpop.eup %3056  ;;  %v1312_v52 = vmul.f32 1.442695, %v1301_v50  ;;  %v74_v50 = vld [vmem:[#allocation4 + $0x108] sm:$0xff] }
 0x2ec   :  { %v1322_v53 = vsel %vm660_vm2, %v3057_v51, 0.0  ;;  %v1288_v5 = vpop.xlane.xlu1 %1287 }
 0x2ed   :  { %3062 = vpow2.f32 %v1312_v52  ;;  %1323 = vadd.xlane.f32.xlu1 %v1322_v53  ;;  %v1291_v56 = vpop.xlane.xlu0 %1290  ;;  %v1302_v6 = vsub.f32 %v1039_v28, %v1288_v5 }
 0x2ee   :  { %v1303_v7 = vsub.f32 %v1116_v29, %v1291_v56 }
 0x2ef   :  { %v3059_v54 = vpop.eup %3058  ;;  %v1314_v9 = vmul.f32 1.442695, %v1302_v6 }
 0x2f0   :  { %v1325_v55 = vsel %vm660_vm2, %v3059_v54, 0.0  ;;  %v1316_v11 = vmul.f32 1.442695, %v1303_v7 }
 0x2f1   :  { %1326 = vadd.xlane.f32.xlu0 %v1325_v55  ;;  %3064 = vpow2.f32 %v1314_v9 }
 0x2f2   :  { %3066 = vpow2.f32 %v1316_v11  ;;  %v2298_v11 = vlaneseq }
 0x2f3   :  { %v3338_v57 = vpop.eup %3060 }
 0x2f4   :  { %v1328_v59 = vsel %vm660_vm2, %v3338_v57, 0.0  ;;  %v1294_v8 = vpop.xlane.xlu1 %1293 }
 0x2f5   :  { %v1297_v62 = vpop.xlane.xlu0 %1296  ;;  %1329 = vadd.xlane.f32.xlu1 %v1328_v59  ;;  %v1304_v10 = vsub.f32 %v1193_v34, %v1294_v8  ;;  %v75_v59 = vld [vmem:[#allocation4 + $0x110] sm:$0xff] }
 0x2f6   :  { %v1305_v12 = vsub.f32 %v1270_v35, %v1297_v62 }
 0x2f7   :  { %v3342_v63 = vpop.eup %3062  ;;  %v1318_v13 = vmul.f32 1.442695, %v1304_v10 }
 0x2f8   :  { %v1331_v3 = vsel %vm660_vm2, %v3342_v63, 0.0  ;;  %v1320_v14 = vmul.f32 1.442695, %v1305_v12  ;;  %v1515_v22 = vpop.permute.xlu1 %1514  ;;  %v3427_v12 = vshrl.u32 %v2298_v11, 7  ;;  %v87_v11 = vld [vmem:[#allocation4 + $0x170] sm:$0xff] }
 0x2f9   :  { %v1439_v4 = vpop.permute.xlu0 %1438  ;;  %1332 = vadd.xlane.f32.xlu0 %v1331_v3  ;;  %3068 = vpow2.f32 %v1318_v13 }
 0x2fa   :  { %2881 = vmatpush3.msra.mxu1 %v1439_v4  ;;  %3070 = vpow2.f32 %v1320_v14  ;;  %v2300_v13 = vsub.s32 0, %v3427_v12  ;;  %v3430_v14 = vld [vmem:[#allocation4 + $0x180] sm:$0xff] }
 0x2fb   :  { %2890 = vmatprep.subr.mxu1 %v3150_v1 }
 0x306   :  { %1666 = vrot.lane.b32.xlu1 %v3263_v60, %s3152_s6  ;;  %v3065_v60 = vpop.eup %3064 }
 0x307   :  { %v3067_v15 = vpop.eup %3066  ;;  %v1334_v16 = vsel %vm660_vm2, %v3065_v60, 0.0 }
 0x30a   :  { %1742 = vrot.lane.b32.xlu1 %v3265_v61, %s3152_s6  ;;  %v3353_v61 = vpop.eup %3068 }
 0x30b   :  { %v3357_v17 = vpop.eup %3070  ;;  %v1340_v21 = vsel %vm660_vm2, %v3353_v61, 0.0 }
 0x30c   :  { %v1343_v19 = vsel %vm660_vm2, %v3357_v17, 0.0 }
 0x30f   :  { %1590 = vrot.lane.b32.xlu0 %v3260_v58, %s3152_s6  ;;  %v1337_v58 = vsel %vm660_vm2, %v3067_v15, 0.0 }
 0x32e   :  { %1338 = vadd.xlane.f32.xlu0 %v1337_v58  ;;  %1335 = vadd.xlane.f32.xlu1 %v1334_v16 }
 0x332   :  { %1344 = vadd.xlane.f32.xlu0 %v1343_v19  ;;  %1341 = vadd.xlane.f32.xlu1 %v1340_v21 }
 0x343   :  { %1894 = vrot.lane.b32.xlu1 %v3271_v2, %s3152_s6 }
 0x348   :  { %1818 = vrot.lane.b32.xlu0 %v3269_v0, %s3152_s6 }
 0x37a   :  { %v1324_v23 = vpop.xlane.xlu1 %1323 }
 0x37b   :  { %3072 = vrcp.f32 %v1324_v23 }
 0x37e   :  { %v1327_v24 = vpop.xlane.xlu0 %1326 }
 0x37f   :  { %3074 = vrcp.f32 %v1327_v24 }
 0x382   :  { %v1330_v25 = vpop.xlane.xlu1 %1329 }
 0x383   :  { %3076 = vrcp.f32 %v1330_v25 }
 0x385   :  { %v3073_v26 = vpop.eup %3072 }
 0x386   :  { %v3367_v27 = vmul.f32 %v3073_v26, %v3057_v51  ;;  %v1333_v28 = vpop.xlane.xlu0 %1332  ;;  %v1667_v32 = vpop.permute.xlu1 %1666  ;;  %v73_v51 = vld [vmem:[#allocation4 + $0x100] sm:$0xff] }
 0x387   :  { %3078 = vrcp.f32 %v1333_v28 }
 0x388   :  { %2878 = vmatmul.mubr.msk.f32.vlgmr.msra.gmra.mrb[18].mxu0 %vm660_vm2, %v3367_v27 }
 0x389   :  { %v3075_v29 = vpop.eup %3074  ;;  %2886 = vmatpush3.msra.mxu0 %v1515_v22  ;;  %2887 = vmatprep.mubr.msk.f32.mxu0 %vm3149_vm0, %v3150_v1 }
 0x38a   :  { %v3373_v0 = vmul.f32 %v3075_v29, %v3059_v54  ;;  %v1591_v2 = vpop.permute.xlu0 %1590  ;;  %2895 = vmatprep.subr.mxu0 %v3150_v1  ;;  %v1743_v35 = vpop.permute.xlu1 %1742 }
 0x38c   :  { %2883 = vmatmul.mubr.msk.f32.vlgmr.msra.gmra.mrb[14].mxu1 %vm660_vm2, %v3373_v0 }
 0x38d   :  { %v3077_v30 = vpop.eup %3076  ;;  %2891 = vmatpush3.msra.mxu1 %v1591_v2  ;;  %2892 = vmatprep.mubr.msk.f32.mxu1 %vm3149_vm0, %v3150_v1 }
 0x38e   :  { %v3381_v31 = vmul.f32 %v3077_v30, %v3338_v57  ;;  %2900 = vmatprep.subr.mxu1 %v3150_v1 }
 0x390   :  { %2888 = vmatmul.mubr.msk.f32.vlgmr.msra.gmra.mrb[20].mxu0 %vm660_vm2, %v3381_v31 }
 0x391   :  { %v3079_v33 = vpop.eup %3078  ;;  %2896 = vmatpush3.msra.mxu0 %v1667_v32  ;;  %2897 = vmatprep.mubr.msk.f32.mxu0 %vm3149_vm0, %v3150_v1 }
 0x392   :  { %v3389_v34 = vmul.f32 %v3079_v33, %v3342_v63  ;;  %2905 = vmatprep.subr.mxu0 %v3150_v1  ;;  %v76_v63 = vld [vmem:[#allocation4 + $0x118] sm:$0xff]  ;;  %v78_v33 = vld [vmem:[#allocation4 + $0x128] sm:$0xff] }
 0x394   :  { %2893 = vmatmul.mubr.msk.f32.vlgmr.msra.gmra.mrb[16].mxu1 %vm660_vm2, %v3389_v34 }
 0x395   :  { %2901 = vmatpush3.msra.mxu1 %v1743_v35  ;;  %2902 = vmatprep.mubr.msk.f32.mxu1 %vm3149_vm0, %v3150_v1 }
 0x396   :  { %2910 = vmatprep.subr.mxu1 %v3150_v1 }
 0x3bb   :  { %v1339_v36 = vpop.xlane.xlu0 %1338  ;;  %v1336_v37 = vpop.xlane.xlu1 %1335 }
 0x3bc   :  { %3080 = vrcp.f32 %v1339_v36  ;;  %v79_v36 = vld [vmem:[#allocation4 + $0x130] sm:$0xff] }
 0x3bd   :  { %3082 = vrcp.f32 %v1336_v37  ;;  %v80_v37 = vld [vmem:[#allocation4 + $0x138] sm:$0xff] }
 0x3bf   :  { %v1345_v38 = vpop.xlane.xlu0 %1344  ;;  %v1342_v39 = vpop.xlane.xlu1 %1341 }
 0x3c0   :  { %3084 = vrcp.f32 %v1345_v38  ;;  %v3017_v38 = vpack.c.bf16 %v80_v37, %v79_v36 }
 0x3c1   :  { %3086 = vrcp.f32 %v1342_v39  ;;  %v81_v39 = vld [vmem:[#allocation4 + $0x140] sm:$0xff] }
 0x3c3   :  { %v1895_v44 = vpop.permute.xlu1 %1894  ;;  %v1819_v46 = vpop.permute.xlu0 %1818 }
 0x3c6   :  { %v3081_v40 = vpop.eup %3080 }
 0x3c7   :  { %v3083_v41 = vpop.eup %3082  ;;  %v3397_v42 = vmul.f32 %v3081_v40, %v3067_v15  ;;  %v82_v40 = vld [vmem:[#allocation4 + $0x148] sm:$0xff] }
 0x3c8   :  { %v3399_v43 = vmul.f32 %v3083_v41, %v3065_v60  ;;  %v2301_v60 = vrot.slane %v3430_v14, %v2300_v13  ;;  %v3021_v41 = vpack.c.bf16 %v82_v40, %v81_v39  ;;  %v88_v13 = vld [vmem:[#allocation4 + $0x178] sm:$0xff] }
 0x3c9   :  { %2903 = vmatmul.mubr.msk.f32.vlgmr.msra.gmra.mrb[18].mxu1 %vm660_vm2, %v3397_v42 }
 0x3ca   :  { %v3085_v45 = vpop.eup %3084  ;;  %2898 = vmatmul.mubr.msk.f32.vlgmr.msra.gmra.mrb[22].mxu0 %vm660_vm2, %v3399_v43  ;;  %2911 = vmatpush3.msra.mxu1 %v1895_v44 }
 0x3cb   :  { %v3087_v47 = vpop.eup %3086  ;;  %v3406_v48 = vmul.f32 %v3085_v45, %v3357_v17  ;;  %2906 = vmatpush3.msra.mxu0 %v1819_v46  ;;  %2907 = vmatprep.mubr.msk.f32.mxu0 %vm3149_vm0, %v3150_v1 }
 0x3cc   :  { %v3411_v49 = vmul.f32 %v3087_v47, %v3353_v61  ;;  %2912 = vmatprep.mubr.msk.f32.mxu1 %vm3149_vm0, %v3150_v1  ;;  %2915 = vmatprep.subr.mxu0 %v74_v50 }
 0x3cd   :  { %2913 = vmatmul.mubr.msk.f32.vlgmr.msra.gmra.mrb[20].mxu1 %vm660_vm2, %v3406_v48 }
 0x3ce   :  { %2908 = vmatmul.mubr.msk.f32.vlgmr.msra.gmra.mrb[24].mxu0 %vm660_vm2, %v3411_v49 }
 0x3cf   :  { %2916 = vmatpush3.msra.mxu0 %v74_v50 }
 0x3d0   :  { %2920 = vmatprep.subr.mxu0 %v73_v51 }
 0x45b   :  { %v1434_v52 = vpop.f32.mrb[18].mxu0 }
 0x45c   :  { %v2879_v53 = vpop.f32.mrb[19].mxu0 }
 0x45d   :  { %v2341_v53 = vsub.s32 4, %v3427_v12 }
 0x45f   :  { %v1510_v54 = vpop.f32.mrb[14].mxu1 }
 0x460   :  { %v2884_v55 = vpop.f32.mrb[15].mxu1 }
 0x463   :  { %v1586_v56 = vpop.f32.mrb[20].mxu0 }
 0x464   :  { %v2889_v57 = vpop.f32.mrb[21].mxu0  ;;  %2917 = vmatprep.mubr.msk.f32.mxu0 %vm660_vm2, %v1586_v56 }
 0x465   :  { %v2342_v57 = vrot.slane %v3430_v14, %v2341_v53 }
 0x467   :  { %v1662_v1 = vpop.f32.mrb[16].mxu1 }
 0x468   :  { %v2894_v62 = vpop.f32.mrb[17].mxu1  ;;  %2918 = vmatmul.mubr.msk.f32.vlgmr.msra.gmra.mrb[26].mxu0 %vm660_vm2, %v1662_v1 }
 0x469   :  { %2922 = vmatprep.mubr.msk.f32.mxu0 %vm660_vm2, %v1434_v52  ;;  %2921 = vmatpush3.msra.mxu0 %v73_v51  ;;  %v2335_v52 = vsub.s32 3, %v3427_v12 }
 0x46a   :  { %2925 = vmatprep.subr.mxu0 %v75_v59 }
 0x470   :  { %2923 = vmatmul.mubr.msk.f32.vlgmr.msra.gmra.mrb[26].mxu0 %vm660_vm2, %v1510_v54  ;;  %v2336_v54 = vrot.slane %v3430_v14, %v2335_v52 }
 0x471   :  { %2926 = vmatpush3.msra.mxu0 %v75_v59 }
 0x472   :  { %2930 = vmatprep.subr.mxu0 %v76_v63 }
 0x49c   :  { %v1814_v3 = vpop.f32.mrb[18].mxu1 }
 0x49d   :  { %v1738_v4 = vpop.f32.mrb[22].mxu0  ;;  %v2904_v5 = vpop.f32.mrb[19].mxu1 }
 0x49e   :  { %v2899_v6 = vpop.f32.mrb[23].mxu0  ;;  %2927 = vmatprep.mubr.msk.f32.mxu0 %vm660_vm2, %v1738_v4  ;;  %v84_v4 = vld [vmem:[#allocation4 + $0x158] sm:$0xff] }
 0x49f   :  { %2928 = vmatmul.mubr.msk.f32.vlgmr.msra.gmra.mrb[26].mxu0 %vm660_vm2, %v1814_v3  ;;  %v83_v3 = vld [vmem:[#allocation4 + $0x150] sm:$0xff] }
 0x4a0   :  { %2931 = vmatpush3.msra.mxu0 %v76_v63  ;;  %v1966_v7 = vpop.f32.mrb[20].mxu1 }
 0x4a1   :  { %v1890_v8 = vpop.f32.mrb[24].mxu0  ;;  %v2914_v9 = vpop.f32.mrb[21].mxu1 }
 0x4a2   :  { %v2909_v10 = vpop.f32.mrb[25].mxu0  ;;  %2932 = vmatprep.mubr.msk.f32.mxu0 %vm660_vm2, %v1890_v8  ;;  %v85_v8 = vld [vmem:[#allocation4 + $0x160] sm:$0xff]  ;;  %v86_v9 = vld [vmem:[#allocation4 + $0x168] sm:$0xff] }
 0x4a3   :  { %v3029_v10 = vpack.c.bf16 %v86_v9, %v85_v8 }
 0x4a7   :  { %2933 = vmatmul.mubr.msk.f32.vlgmr.msra.gmra.mrb[26].mxu0 %vm660_vm2, %v1966_v7  ;;  %v3025_v7 = vpack.c.bf16 %v84_v4, %v83_v3 }
 0x57a   :  { %v2934_v15 = vpop.f32.mrb[26].mxu0 }
 0x57b   :  { %v2303_v61 = vadd.f32 %v2934_v15, %v2301_v60  ;;  %v2287_v58 = vpop.f32.mrb[27].mxu0  ;;  %v2347_v15 = vsub.s32 1, %v3427_v12 }
 0x57c   :  { %v2302_v16 = vadd.f32 %v2301_v60, %v2287_v58  ;;  %v3033_v60 = vpack.c.bf16 %v88_v13, %v87_v11 }
 0x57d   :  { %v2305_v17 = vadd.f32 %v2303_v61, %v3207_v20  ;;  %v2348_v61 = vrot.slane %v3430_v14, %v2347_v15 }
 0x57e   :  { %v2304_v19 = vadd.f32 %v2302_v16, %v3204_v18  ;;  %v77_v18 = vld [vmem:[#allocation4 + $0x120] sm:$0xff] }
 0x57f   :  { %v2309_v21 = vsel %vm90_vm1, %v2305_v17, 0.0  ;;  %v3013_v35 = vpack.c.bf16 %v78_v33, %v77_v18 }
 0x580   :  { %2310 = vadd.xlane.f32.xlu1 %v2309_v21  ;;  %v2306_v22 = vsel %vm90_vm1, %v2304_v19, 0.0 }
 0x581   :  { %2307 = vadd.xlane.f32.xlu0 %v2306_v22  ;;  %3014 = vmatprep.subr.bf16.mxu1 %v3013_v35 }
 0x582   :  { %3016 = vmatpush3.bf16.msra.mxu1 %v3013_v35 }
 0x583   :  { %3018 = vmatprep.subr.bf16.mxu1 %v3017_v38 }
 0x586   :  { %3020 = vmatpush3.bf16.msra.mxu1 %v3017_v38 }
 0x587   :  { %3022 = vmatprep.subr.bf16.mxu1 %v3021_v41 }
 0x60d   :  { %v2311_v23 = vpop.xlane.xlu1 %2310 }
 0x60e   :  { %v2314_v24 = vmul.f32 0.03125, %v2311_v23  ;;  %v2308_v25 = vpop.xlane.xlu0 %2307  ;;  %v2434_v23 = vsub.s32 2, %v3427_v12 }
 0x60f   :  { %v2313_v26 = vmul.f32 0.03125, %v2308_v25 }
 0x610   :  { %v2316_v28 = vsub.f32 %v2305_v17, %v2314_v24  ;;  %v2435_v24 = vrot.slane %v3430_v14, %v2434_v23 }
 0x611   :  { %v2315_v29 = vsub.f32 %v2304_v19, %v2313_v26 }
 0x612   :  { %v2318_v32 = vmul.f32 %v2316_v28, %v2316_v28 }
 0x613   :  { %v2317_v2 = vmul.f32 %v2315_v29, %v2315_v29 }
 0x614   :  { %v2322_v20 = vsel %vm90_vm1, %v2318_v32, 0.0 }
 0x615   :  { %v2319_v30 = vsel %vm90_vm1, %v2317_v2, 0.0 }
 0x616   :  { %2320 = vadd.xlane.f32.xlu0 %v2319_v30 }
 0x61a   :  { %2323 = vadd.xlane.f32.xlu0 %v2322_v20 }
 0x6a3   :  { %v2321_v44 = vpop.xlane.xlu0 %2320 }
 0x6a4   :  { %v2325_v45 = vmul.f32 0.03125, %v2321_v44 }
 0x6a6   :  { %v2327_v46 = vadd.f32 1e-06, %v2325_v45 }
 0x6a7   :  { %v2324_v47 = vpop.xlane.xlu0 %2323 }
 0x6a8   :  { %3088 = vrsqrt.f32 %v2327_v46  ;;  %v2326_v50 = vmul.f32 0.03125, %v2324_v47 }
 0x6aa   :  { %v2328_v51 = vadd.f32 1e-06, %v2326_v50 }
 0x6ac   :  { %3090 = vrsqrt.f32 %v2328_v51 }
 0x6b2   :  { %v3089_v55 = vpop.eup %3088 }
 0x6b3   :  { %v2331_v56 = vmul.f32 %v3089_v55, %v2315_v29 }
 0x6b5   :  { %v2337_v1 = vmul.f32 %v2336_v54, %v2331_v56 }
 0x6b6   :  { %v3091_v59 = vpop.eup %3090 }
 0x6b7   :  { %v2332_v62 = vmul.f32 %v3091_v59, %v2316_v28  ;;  %v2343_v63 = vadd.f32 %v2342_v57, %v2337_v1 }
 0x6b9   :  { %v2338_v5 = vmul.f32 %v2336_v54, %v2332_v62  ;;  %2943 = vmatprep.mubr.msk.f32.mxu1 %vm90_vm1, %v2343_v63 }
 0x6bb   :  { %v2344_v6 = vadd.f32 %v2342_v57, %v2338_v5 }
 0x6bd   :  { %2944 = vmatmul.mubr.msk.f32.vlgmr.msra.gmra.mrb[22].mxu1 %vm90_vm1, %v2344_v6 }
 0x6be   :  { %3024 = vmatpush3.bf16.msra.mxu1 %v3021_v41 }
 0x6bf   :  { %3026 = vmatprep.subr.bf16.mxu1 %v3025_v7 }
 0x6c2   :  { %3028 = vmatpush3.bf16.msra.mxu1 %v3025_v7 }
 0x6c3   :  { %3030 = vmatprep.subr.bf16.mxu1 %v3029_v10 }
 0x6c6   :  { %3032 = vmatpush3.bf16.msra.mxu1 %v3029_v10 }
 0x6c7   :  { %3034 = vmatprep.subr.bf16.mxu1 %v3033_v60 }
 0x6ca   :  { %3036 = vmatpush3.bf16.msra.mxu1 %v3033_v60 }
 0x790   :  { %v2945_v58 = vpop.f32.mrb[22].mxu1 }
 0x791   :  { %v2427_v16 = vadd.f32 %v2945_v58, %v2348_v61  ;;  %v2421_v17 = vpop.f32.mrb[23].mxu1 }
 0x792   :  { %v2422_v19 = vadd.f32 %v2421_v17, %v2348_v61 }
 0x793   :  { %v2431_v22 = vmax.f32 %v2427_v16, 0.0 }
 0x794   :  { %v2430_v21 = vmax.f32 %v2422_v19, 0.0 }
 0x796   :  { %2962 = vmatprep.mubr.msk.f32.mxu1 %vm2436_vm3, %v2430_v21 }
 0x797   :  { %2963 = vmatmul.mubr.msk.f32.vlgmr.msra.gmra.mrb[24].mxu1 %vm2436_vm3, %v2431_v22 }
 0x86a   :  { %v2964_v25 = vpop.f32.mrb[24].mxu1 }
 0x86b   :  { %v2515_v26 = vadd.f32 %v2964_v25, %v2435_v24  ;;  %v2509_v28 = vpop.f32.mrb[25].mxu1 }
 0x86c   :  { %v2510_v29 = vadd.f32 %v2509_v28, %v2435_v24 }
 0x86d   :  { %v2519_v2 = vadd.f32 %v2515_v26, %v2344_v6 }
 0x86e   :  { %v2518_v30 = vadd.f32 %v2510_v29, %v2343_v63 }
 0x86f   :  { %v2523_v32 = vsel %vm90_vm1, %v2519_v2, 0.0 }
 0x870   :  { %2524 = vadd.xlane.f32.xlu0 %v2523_v32  ;;  %v2520_v20 = vsel %vm90_vm1, %v2518_v30, 0.0 }
 0x871   :  { %2521 = vadd.xlane.f32.xlu1 %v2520_v20 }
 0x882   :  { %2558 = vrot.lane.b32.xlu1 %v3367_v27, %s3153_s7 }
 0x886   :  { %2564 = vrot.lane.b32.xlu1 %v3381_v31, %s3154_s8 }
 0x88a   :  { %2566 = vrot.lane.b32.xlu1 %v3389_v34, %s3154_s8 }
 0x8fd   :  { %v2525_v18 = vpop.xlane.xlu0 %2524 }
 0x8fe   :  { %v2527_v33 = vmul.f32 0.03125, %v2525_v18  ;;  %v2522_v35 = vpop.xlane.xlu1 %2521 }
 0x8ff   :  { %v2526_v36 = vmul.f32 0.03125, %v2522_v35 }
 0x900   :  { %v2529_v37 = vsub.f32 %v2519_v2, %v2527_v33 }
 0x901   :  { %v2528_v38 = vsub.f32 %v2518_v30, %v2526_v36 }
 0x902   :  { %v2531_v39 = vmul.f32 %v2529_v37, %v2529_v37  ;;  %v2559_v27 = vpop.permute.xlu1 %2558 }
 0x903   :  { %v2530_v40 = vmul.f32 %v2528_v38, %v2528_v38 }
 0x904   :  { %v2535_v41 = vsel %vm90_vm1, %v2531_v39, 0.0 }
 0x905   :  { %2536 = vadd.xlane.f32.xlu0 %v2535_v41  ;;  %v2532_v44 = vsel %vm90_vm1, %v2530_v40, 0.0 }
 0x906   :  { %2533 = vadd.xlane.f32.xlu1 %v2532_v44  ;;  %v2565_v31 = vpop.permute.xlu1 %2564 }
 0x90a   :  { %v2567_v34 = vpop.permute.xlu1 %2566 }
 0x917   :  { %2572 = vrot.lane.b32.xlu1 %v3397_v42, %s3155_s9  ;;  %v2554_v42 = vsub.s32 6, %v3427_v12 }
 0x919   :  { %v2555_v55 = vrot.slane %v3430_v14, %v2554_v42 }
 0x91b   :  { %2560 = vrot.lane.b32.xlu0 %v3373_v0, %s3153_s7  ;;  %2578 = vrot.lane.b32.xlu1 %v3406_v48, %s3156_s10  ;;  %v2548_v0 = vsub.s32 5, %v3427_v12 }
 0x91f   :  { %2570 = vrot.lane.b32.xlu0 %v3399_v43, %s3155_s9  ;;  %v2549_v43 = vrot.slane %v3430_v14, %v2548_v0 }
 0x923   :  { %2576 = vrot.lane.b32.xlu0 %v3411_v49, %s3156_s10 }
 0x992   :  { %v2537_v45 = vpop.xlane.xlu0 %2536 }
 0x993   :  { %v2539_v46 = vmul.f32 0.03125, %v2537_v45  ;;  %v2534_v47 = vpop.xlane.xlu1 %2533 }
 0x994   :  { %v2538_v50 = vmul.f32 0.03125, %v2534_v47 }
 0x995   :  { %v2541_v51 = vadd.f32 1e-06, %v2539_v46 }
 0x996   :  { %v2540_v52 = vadd.f32 1e-06, %v2538_v50  ;;  %v2561_v48 = vpop.permute.xlu0 %2560 }
 0x997   :  { %3092 = vrsqrt.f32 %v2541_v51  ;;  %v2573_v1 = vpop.permute.xlu1 %2572 }
 0x998   :  { %3094 = vrsqrt.f32 %v2540_v52 }
 0x99a   :  { %v2571_v62 = vpop.permute.xlu0 %2570 }
 0x99b   :  { %v2579_v8 = vpop.permute.xlu1 %2578 }
 0x99e   :  { %v2577_v10 = vpop.permute.xlu0 %2576 }
 0x9a1   :  { %v3093_v53 = vpop.eup %3092 }
 0x9a2   :  { %v3095_v49 = vpop.eup %3094  ;;  %v2545_v54 = vmul.f32 %v3093_v53, %v2529_v37 }
 0x9a3   :  { %v2544_v56 = vmul.f32 %v3095_v49, %v2528_v38 }
 0x9a4   :  { %v2551_v57 = vmul.f32 %v2549_v43, %v2545_v54 }
 0x9a5   :  { %v2550_v59 = vmul.f32 %v2549_v43, %v2544_v56 }
 0x9a6   :  { %v2557_v63 = vadd.f32 %v2555_v55, %v2551_v57 }
 0x9a7   :  { %v2556_v3 = vadd.f32 %v2555_v55, %v2550_v59 }
 0x9a8   :  { %v2583_v4 = vsel %vm90_vm1, %v2557_v63, %v2561_v48 }
 0x9a9   :  { %v2586_v12 = vsel %vm2584_vm4, %v2583_v4, %v2567_v34  ;;  %v2582_v5 = vsel %vm90_vm1, %v2556_v3, %v2559_v27 }
 0x9aa   :  { %v2589_v6 = vsel %vm2587_vm5, %v2586_v12, %v2573_v1  ;;  %v2585_v7 = vsel %vm2584_vm4, %v2582_v5, %v2565_v31 }
 0x9ab   :  { %v2588_v9 = vsel %vm2587_vm5, %v2585_v7, %v2571_v62  ;;  %v2592_v14 = vsel %vm2590_vm6, %v2589_v6, %v2579_v8 }
 0x9ac   :  { %v2594_v11 = vsel %vm2436_vm3, %v2592_v14, 0.0  ;;  %v2591_v13 = vsel %vm2590_vm6, %v2588_v9, %v2577_v10 }
 0x9ad   :  { %2596 = vst [vmem:[%s3479_s2 + $0x8] sm:$0xff] %v2594_v11  ;;  %v2593_v60 = vsel %vm2436_vm3, %v2591_v13, 0.0 }
 0x9ae   :  { %2595 = vst [vmem:[%s3479_s2] sm:$0xff] %v2593_v60 }
 0x9af   :  { %2601 = vsyncpa [#allocation3], 1 }
 0x9b0   :  { %2602 = vsyncpa [#allocation5], 1 }

</bundles_post_ra>
